<compile_context>
chip_gen: v5e
topology: v5e:2x2
jax: 0.10.0
libtpu: 0.0.40
codegen_flags: <defaults>
</compile_context>

<pallas_src>
import jax
import jax.numpy as jnp
from jax.experimental import pallas as pl
from jax.experimental.pallas import tpu as pltpu


# Conservative double-buffered working-set budget (bytes); fits the default
# scoped-VMEM limits on v5e (16 MiB), v6e (32 MiB) and v7x (32 MiB).
_VMEM_BUDGET_BYTES = 12 * 1024 * 1024
_MAX_BLOCK_ROWS = 2048


def _sublane_multiple(itemsize):
    # f32 -> 8 rows per vreg, bf16 -> 16, int8/fp8 -> 32.
    return 8 * max(1, 4 // int(itemsize))


def _pick_block_rows(n_rows, row_bytes, itemsize):
    """Largest row tile whose double-buffered working set fits the budget."""
    sub = _sublane_multiple(itemsize)
    cap = _VMEM_BUDGET_BYTES // (2 * max(1, row_bytes))
    cap = min(cap, _MAX_BLOCK_ROWS)
    cap = max((cap // sub) * sub, sub)
    if n_rows <= cap:
        return n_rows  # single grid step; full-extent block is always legal
    return cap


def _lane_dense_shape(n, c):
    """Row-major reshape of an (n, c) slab to a lane-dense 2-D shape."""
    total = n * c
    best = None
    for lanes in (4096, 2048, 1024, 512, 256, 128):
        if total % lanes != 0:
            continue
        rows = total // lanes
        if rows >= 8:
            return rows, lanes
        if best is None:
            best = (rows, lanes)
    return best if best is not None else (n, c)


# ---------------------------------------------------------------------------
# Kernels
# ---------------------------------------------------------------------------
def _add_kernel(a_ref, b_ref, o_ref):
    o_ref[...] = a_ref[...] + b_ref[...]


def _concat_stacked_kernel(a_ref, b_ref, o_ref):
    # o is (bn, 2, C): full-extent stores along the lane dim (no offset writes).
    o_ref[:, 0, :] = a_ref[...]
    o_ref[:, 1, :] = b_ref[...]


def _both_stacked_kernel(a_ref, b_ref, o_ref):
    a = a_ref[...]
    o_ref[:, 0, :] = a
    o_ref[:, 1, :] = a + b_ref[...]


def _concat_general_kernel(a_ref, b_ref, o_ref):
    # Fallback only for 'concatenation' with C1 != C2 (offset stores).
    c1 = a_ref.shape[-1]
    o_ref[:, :c1] = a_ref[...]
    o_ref[:, c1:] = b_ref[...]


# ---------------------------------------------------------------------------
# pallas_call wrappers
# ---------------------------------------------------------------------------
def _call_2d(kernel, a, b, out_cols, *, flops_per_elem=0):
    n = a.shape[0]
    c1, c2 = a.shape[1], b.shape[1]
    itemsize = a.dtype.itemsize
    row_bytes = (c1 + c2 + out_cols) * itemsize
    bn = _pick_block_rows(n, row_bytes, itemsize)
    grid = (pl.cdiv(n, bn),)
    cost = pl.CostEstimate(
        flops=flops_per_elem * n * min(c1, c2),
        transcendentals=0,
        bytes_accessed=n * row_bytes,
    )
    return pl.pallas_call(
        kernel,
        out_shape=jax.ShapeDtypeStruct((n, out_cols), a.dtype),
        grid_spec=pltpu.PrefetchScalarGridSpec(
            num_scalar_prefetch=0,
            grid=grid,
            in_specs=[pl.BlockSpec((bn, c1), lambda i: (i, 0)),
                      pl.BlockSpec((bn, c2), lambda i: (i, 0))],
            out_specs=pl.BlockSpec((bn, out_cols), lambda i: (i, 0)),
        ),
        compiler_params=pltpu.CompilerParams(
            dimension_semantics=("parallel",)),
        cost_estimate=cost,
    )(a, b)


def _call_stacked(kernel, a, b, *, flops_per_elem=0):
    n, c = a.shape
    itemsize = a.dtype.itemsize
    row_bytes = 4 * c * itemsize  # read a, read b, write 2*c
    bn = _pick_block_rows(n, row_bytes, itemsize)
    grid = (pl.cdiv(n, bn),)
    cost = pl.CostEstimate(
        flops=flops_per_elem * n * c,
        transcendentals=0,
        bytes_accessed=n * row_bytes,
    )
    out3 = pl.pallas_call(
        kernel,
        out_shape=jax.ShapeDtypeStruct((n, 2, c), a.dtype),
        grid_spec=pltpu.PrefetchScalarGridSpec(
            num_scalar_prefetch=0,
            grid=grid,
            in_specs=[pl.BlockSpec((bn, c), lambda i: (i, 0)),
                      pl.BlockSpec((bn, c), lambda i: (i, 0))],
            out_specs=pl.BlockSpec((bn, 2, c), lambda i: (i, 0, 0)),
        ),
        compiler_params=pltpu.CompilerParams(
            dimension_semantics=("parallel",)),
        cost_estimate=cost,
    )(a, b)
    # Row-major view: (n, 2, c) -> (n, 2*c) keeps [a_i | b_i] ordering.
    return out3.reshape(n, 2 * c)


def _residual(a, b):
    n, c = a.shape
    rows, lanes = _lane_dense_shape(n, c)
    a2 = a.reshape(rows, lanes)
    b2 = b.reshape(rows, lanes)
    out = _call_2d(_add_kernel, a2, b2, lanes, flops_per_elem=1)
    return out.reshape(n, c)


# ---------------------------------------------------------------------------
# Module-equivalent wrapper
# ---------------------------------------------------------------------------
class BimodalFusion:
    MODES = ['residual', 'concatenation', 'both', 'modality']

    def __init__(self, mode='residual'):
        if mode not in self.MODES:
            raise NotImplementedError(
                f"Unknown fusion mode='{mode}'. Please choose among supported "
                f"modes: {self.MODES}.")
        self.mode = mode

    def __call__(self, x_main, x_mod):
        # None-handling glue (matches the PyTorch forward).
        if x_main is None:
            return x_mod
        if x_mod is None:
            return x_main
        # TODO(synk): x_mod.F (sparse-tensor feature extraction) has no JAX
        # equivalent here; plain arrays are assumed.
        if self.mode == 'modality':
            # Pure pass-through: no kernel / no HBM copy.
            return x_mod

        dtype = jnp.result_type(x_main.dtype, x_mod.dtype)
        a = x_main.astype(dtype)
        b = x_mod.astype(dtype)

        if self.mode == 'residual':
            assert a.shape == b.shape, "residual fusion needs matching shapes"
            return _residual(a, b)
        if self.mode == 'concatenation':
            if a.shape[1] == b.shape[1]:
                return _call_stacked(_concat_stacked_kernel, a, b)
            return _call_2d(_concat_general_kernel, a, b,
                            a.shape[1] + b.shape[1])
        # 'both'
        assert a.shape[1] == b.shape[1], "'both' fusion needs C1 == C2"
        return _call_stacked(_both_stacked_kernel, a, b, flops_per_elem=1)


# ---------------------------------------------------------------------------
# Demo / self-check
# ---------------------------------------------------------------------------
if __name__ == "__main__":
    key = jax.random.PRNGKey(0)
    k1, k2, k3, k4, k5 = jax.random.split(key, 5)

    N, C = 128, 32
    x_main = jax.random.normal(k1, (N, C), dtype=jnp.float32)
    x_mod = jax.random.normal(k2, (N, C), dtype=jnp.float32)

    refs = {
        'residual': x_main + x_mod,
        'concatenation': jnp.concatenate([x_main, x_mod], axis=-1),
        'both': jnp.concatenate([x_main, x_main + x_mod], axis=-1),
        'modality': x_mod,
    }

    for mode in BimodalFusion.MODES:
        fusion = BimodalFusion(mode=mode)
        out = jax.block_until_ready(fusion(x_main, x_mod))
        assert out.shape == refs[mode].shape, (mode, out.shape)
        assert jnp.allclose(out, refs[mode], atol=1e-6), mode

    # Concatenation with mismatched channel widths (general fallback kernel).
    x_mod_w = jax.random.normal(k3, (N, 48), dtype=jnp.float32)
    out = jax.block_until_ready(
        BimodalFusion(mode='concatenation')(x_main, x_mod_w))
    assert jnp.allclose(out, jnp.concatenate([x_main, x_mod_w], axis=-1),
                        atol=1e-6)

    # Arbitrary N (not a multiple of 8) — full-extent blocks / cdiv grid.
    a_odd = jax.random.normal(k4, (120, C), dtype=jnp.float32)
    b_odd = jax.random.normal(k5, (120, C), dtype=jnp.float32)
    out_r = jax.block_until_ready(BimodalFusion(mode='residual')(a_odd, b_odd))
    assert jnp.allclose(out_r, a_odd + b_odd, atol=1e-6)
    out_b = jax.block_until_ready(BimodalFusion(mode='both')(a_odd, b_odd))
    assert jnp.allclose(out_b, jnp.concatenate([a_odd, a_odd + b_odd], axis=-1),
                        atol=1e-6)

    # None-handling paths
    fusion = BimodalFusion(mode='residual')
    assert fusion(None, x_mod) is x_mod
    assert fusion(x_main, None) is x_main

    print("KERNEL_OK")
</pallas_src>

<mosaic_0001>
module attributes {stable_mosaic.version = 11 : i64} {
  func.func @_add_kernel(%arg0: i32, %arg1: memref<8x512xf32, #tpu.memory_space<vmem>>, %arg2: memref<8x512xf32, #tpu.memory_space<vmem>>, %arg3: memref<8x512xf32, #tpu.memory_space<vmem>>) attributes {dimension_semantics = [#tpu.dimension_semantics<parallel>], iteration_bounds = array<i64: 1>, scalar_prefetch = 0 : i64, scratch_operands = 0 : i64, tpu.core_type = #tpu.core_type<tc>, window_params = [{transform_indices = @transform_0, window_bounds = array<i64: 8, 512>}, {transform_indices = @transform_1, window_bounds = array<i64: 8, 512>}, {transform_indices = @transform_2, window_bounds = array<i64: 8, 512>}]} {
    %c0 = arith.constant 0 : index
    %c0_0 = arith.constant 0 : index
    %0 = vector.load %arg1[%c0, %c0_0] : memref<8x512xf32, #tpu.memory_space<vmem>>, vector<8x512xf32>
    %c0_1 = arith.constant 0 : index
    %c0_2 = arith.constant 0 : index
    %1 = vector.load %arg2[%c0_1, %c0_2] : memref<8x512xf32, #tpu.memory_space<vmem>>, vector<8x512xf32>
    %2 = arith.addf %0, %1 : vector<8x512xf32>
    %c0_3 = arith.constant 0 : index
    %c0_4 = arith.constant 0 : index
    %3 = vector.load %arg3[%c0_3, %c0_4] : memref<8x512xf32, #tpu.memory_space<vmem>>, vector<8x512xf32>
    tpu.vector_store %arg3[%c0_3, %c0_4], %2 {strides = array<i32>} : memref<8x512xf32, #tpu.memory_space<vmem>>, vector<8x512xf32>,
    return
  }
  func.func @transform_0(%arg0: i32) -> (i32, i32) {
    %c0_i32 = arith.constant 0 : i32
    %c0_i32_0 = arith.constant 0 : i32
    return %arg0, %c0_i32 : i32, i32
  }
  func.func @transform_1(%arg0: i32) -> (i32, i32) {
    %c0_i32 = arith.constant 0 : i32
    %c0_i32_0 = arith.constant 0 : i32
    return %arg0, %c0_i32 : i32, i32
  }
  func.func @transform_2(%arg0: i32) -> (i32, i32) {
    %c0_i32 = arith.constant 0 : i32
    %c0_i32_0 = arith.constant 0 : i32
    return %arg0, %c0_i32 : i32, i32
  }
}

</mosaic_0001>

<bundles_post_ra>
// kernel: tpu_custom_call.1
= control target key start
LH: loop header
LB: loop body
LE: loop exit
PB: predicated region body
PF: predicated region fallthrough
CT: control target
= control target key end

     0   :  { %7 = vsyncpa [#allocation3], 0  ;;  %s182_s0 = inlined_call_operand.hbm [shape: f32[8,512], index: 0, kind: input, shape index: {}]   ;;  %s183_s1 = inlined_call_operand.hbm [shape: f32[8,512], index: 1, kind: input, shape index: {}]   ;;  %s184_s2 = inlined_call_operand.hbm [shape: f32[8,512], index: 2, kind: output, shape index: {}]  }
   0x1   :  { %8 = vsyncpa [#allocation6], 0 }
   0x2   :  { %9 = vsyncpa [#allocation4], 0  ;;  %s15_s11 = sshll.u32 %s182_s0, 4  ;;  %s155_s12 = smov [#allocation2]   ;;  %s16_s11 = int_to_ptr.hbm [resolvable:$true] %s15_s11 }
   0x3   :  { %s17_s13 = sshll.u32 %s155_s12, 4  ;;  %s26_s16 = sshll.u32 %s183_s1, 4  ;;  %s18_s13 = int_to_ptr.vmem [resolvable:$true] %s17_s13  ;;  %s27_s16 = int_to_ptr.hbm [resolvable:$true] %s26_s16 }
   0x4   :  { %20 = dma.hbm_to_vmem [thread:$0]  %s16_s11, 512, %s18_s13, [#allocation3]  }
   0x5   :  { %s156_s17 = smov [#allocation5]  }
   0x6   :  { %s28_s18 = sshll.u32 %s156_s17, 4  ;;  %s29_s18 = int_to_ptr.vmem [resolvable:$true] %s28_s18 }
   0x7   :  { %31 = dma.hbm_to_vmem [thread:$0]  %s27_s16, 512, %s29_s18, [#allocation6]  }
   0x8   :  { %149 = dma.done.wait [#allocation3], 512  }
   0x9   :  { %150 = vsyncadd [#allocation3], 4294966784 }
   0xa   :  { %151 = dma.done.wait [#allocation6], 512  }
   0xb   :  { %152 = vsyncadd [#allocation6], 4294966784  ;;  %v40_v0 = vld [vmem:[#allocation2] sm:$0xff]  ;;  %v41_v2 = vld [vmem:[#allocation2 + $0x8] sm:$0xff]  ;;  %s157_s0 = smov [#allocation7]   ;;  %s63_s21 = sshll.u32 %s184_s2, 4  ;;  %s64_s21 = int_to_ptr.hbm [resolvable:$true] %s63_s21 }
   0xc   :  { %v44_v1 = vld [vmem:[#allocation5] sm:$0xff]  ;;  %v45_v4 = vld [vmem:[#allocation5 + $0x8] sm:$0xff]  ;;  %v42_v5 = vld [vmem:[#allocation2 + $0x10] sm:$0xff]  ;;  %s61_s19 = sshll.u32 %s157_s0, 4  ;;  %s62_s19 = int_to_ptr.vmem [resolvable:$true] %s61_s19 }
   0xd   :  { %v48_v3 = vadd.f32 %v44_v1, %v40_v0  ;;  %v46_v6 = vld [vmem:[#allocation5 + $0x10] sm:$0xff]  ;;  %v49_v7 = vadd.f32 %v45_v4, %v41_v2  ;;  %v43_v9 = vld [vmem:[#allocation2 + $0x18] sm:$0xff] }
   0xe   :  { %v50_v8 = vadd.f32 %v46_v6, %v42_v5  ;;  %v47_v10 = vld [vmem:[#allocation5 + $0x18] sm:$0xff] }
   0xf   :  { %52 = vst [vmem:[#allocation7] sm:$0xff] %v48_v3  ;;  %v51_v11 = vadd.f32 %v47_v10, %v43_v9 }
  0x10   :  { %53 = vst [vmem:[#allocation7 + $0x8] sm:$0xff] %v49_v7 }
  0x11   :  { %54 = vst [vmem:[#allocation7 + $0x10] sm:$0xff] %v50_v8 }
  0x12   :  { %55 = vst [vmem:[#allocation7 + $0x18] sm:$0xff] %v51_v11 }
  0x13   :  { %66 = dma.vmem_to_hbm [thread:$0]  %s62_s19, 512, %s64_s21, [#allocation4]  }
  0x14   :  { %153 = dma.done.wait [#allocation4], 512  }
  0x15   :  { %154 = vsyncadd [#allocation4], 4294966784 }
  0x16   :  { %71 = vsyncpa [#allocation3], 1 }
  0x17   :  { %72 = vsyncpa [#allocation6], 1 }
  0x18   :  { %73 = vsyncpa [#allocation4], 1 }

</bundles_post_ra>
